<compile_context>
chip_gen: v7x
topology: tpu7x:2x2x1
jax: 0.10.0
libtpu: 0.0.40
codegen_flags: <defaults>
</compile_context>

<pallas_src>
import math
import numpy as np
import jax
import jax.numpy as jnp
from jax.experimental import pallas as pl
from jax.experimental.pallas import tpu as pltpu


def _round_up(x, m):
    return ((x + m - 1) // m) * m


# ----------------------------------------------------------------------------
# Pallas kernel
# ----------------------------------------------------------------------------
def tokenizer_kernel(meta_ref, feat_ref, tabs_ref, ordw_ref, out_ref):
    # meta_ref : [TM, 8]    int32  cols: [g0, g1, l0, l1, keep, 0, 0, 0]
    # feat_ref : [TM, D]    f32    padded node/edge features
    # tabs_ref : [2*NN, D]  f32    rows 0..NN-1 = orf @ W_top, rows NN.. = orf @ W_bot
    # ordw_ref : [2, D]     f32    order_encoder embedding table
    # out_ref  : [TM, D]    f32
    tm = meta_ref.shape[0]
    nn2 = tabs_ref.shape[0]
    nn = nn2 // 2

    meta = meta_ref[...]
    g0 = meta[:, 0:1]
    g1 = meta[:, 1:2]
    l0 = meta[:, 2:3]
    l1 = meta[:, 3:4]
    keep = meta[:, 4:5].astype(jnp.float32)

    # "two-hot" gather of the per-node ORF projections on the MXU:
    #   proj[r] = tabs[g0[r]] + tabs[NN + g1[r]]
    lane_ids = jax.lax.broadcasted_iota(jnp.int32, (tm, nn2), 1)
    twohot = jnp.logical_or(lane_ids == g0, lane_ids == (g1 + nn)).astype(jnp.float32)
    proj = jnp.dot(twohot, tabs_ref[...], preferred_element_type=jnp.float32)

    # order embedding: w0 + o * (w1 - w0), with o = (local src == local dst)
    w0 = ordw_ref[0:1, :]
    dw = ordw_ref[1:2, :] - w0
    o = (l0 == l1).astype(jnp.float32)

    out_ref[...] = (feat_ref[...] + proj + w0 + o * dw) * keep


def tokenizer_pallas(padded_feature, meta, orf_w_cat, order_w, *, tile_rows=256):
    B, T, D = padded_feature.shape
    N = B * T
    NN2 = orf_w_cat.shape[0]

    feat = padded_feature.reshape(N, D).astype(jnp.float32)
    meta2 = meta.reshape(N, 8).astype(jnp.int32)

    # Tile the row axis; pad rows so blocks tile evenly (padded rows have
    # keep == 0 -> zero output, sliced off below).
    TM = min(tile_rows, _round_up(N, 8))
    Np = _round_up(N, TM)
    if Np != N:
        feat = jnp.pad(feat, ((0, Np - N), (0, 0)))
        meta2 = jnp.pad(meta2, ((0, Np - N), (0, 0)))

    grid = (pl.cdiv(Np, TM),)

    # Rough VMEM budget: double-buffered streamed blocks + resident tables,
    # accounting for 128-lane padding, with 2x margin.  Clamp to a v7x-safe cap.
    d_pad = _round_up(D, 128)
    est = 2 * (2 * (TM * d_pad * 4        # feat block
                    + TM * 128 * 4        # meta block (8 int32 cols -> 128 lanes)
                    + TM * d_pad * 4)     # out block
               + NN2 * d_pad * 4          # resident ORF-projection table
               + 8 * d_pad * 4)           # resident order table
    vmem_limit = int(min(64 * 1024 * 1024, max(est, 16 * 1024 * 1024)))

    cost = pl.CostEstimate(
        flops=2 * Np * NN2 * D + 6 * Np * D,
        transcendentals=0,
        bytes_accessed=Np * 8 * 4 + 2 * Np * D * 4 + NN2 * D * 4 + 2 * D * 4,
    )

    out = pl.pallas_call(
        tokenizer_kernel,
        out_shape=jax.ShapeDtypeStruct((Np, D), jnp.float32),
        grid=grid,
        in_specs=[
            pl.BlockSpec((TM, 8), lambda i: (i, 0)),
            pl.BlockSpec((TM, D), lambda i: (i, 0)),
            pl.BlockSpec((NN2, D), lambda i: (0, 0)),   # VMEM-resident table
            pl.BlockSpec((2, D), lambda i: (0, 0)),     # VMEM-resident table
        ],
        out_specs=pl.BlockSpec((TM, D), lambda i: (i, 0)),
        compiler_params=pltpu.CompilerParams(
            dimension_semantics=("parallel",),
            vmem_limit_bytes=vmem_limit),
        cost_estimate=cost,
    )(meta2, feat, orf_w_cat.astype(jnp.float32), order_w.astype(jnp.float32))

    return out[:N].reshape(B, T, D)


# ----------------------------------------------------------------------------
# Glue: vectorized get_batch + index construction (numpy indices, single gathers)
# node_num / edge_num are static Python lists, as in the PyTorch module.
# ----------------------------------------------------------------------------
def prepare_tokens(node_feature, edge_index, edge_feature, node_num, edge_num,
                   indices_subnodes, perturb=None):
    B = len(node_num)
    D = node_feature.shape[-1]
    node_num_np = np.asarray(node_num, np.int32)
    edge_num_np = np.asarray(edge_num, np.int32)
    seq_len_np = node_num_np + edge_num_np
    T = int(seq_len_np.max())
    total_nodes = int(node_num_np.sum())
    total_edges = int(edge_num_np.sum())
    n_off = np.concatenate([[0], np.cumsum(node_num_np)[:-1]]).astype(np.int32)
    e_off = np.concatenate([[0], np.cumsum(edge_num_np)[:-1]]).astype(np.int32)

    tok = np.arange(T, dtype=np.int32)[None, :]
    nn = node_num_np[:, None]
    sl = seq_len_np[:, None]
    node_tok = tok < nn
    edge_tok = (tok >= nn) & (tok < sl)
    pad_tok = tok >= sl

    if perturb is not None:
        node_feature = node_feature + jnp.concatenate(
            [perturb[g, :node_num[g]] for g in range(B)], axis=0
        ).astype(node_feature.dtype)

    # padded_feature: single gather from concat([node_feat, edge_feat, zero_row])
    zero_row = total_nodes + total_edges
    feat_src = np.where(
        node_tok, n_off[:, None] + tok,
        np.where(edge_tok, total_nodes + e_off[:, None] + (tok - nn), zero_row),
    ).astype(np.int32)
    feat_flat = jnp.concatenate(
        [node_feature, edge_feature, jnp.zeros((1, D), node_feature.dtype)], axis=0)
    padded_feature = jnp.take(feat_flat, jnp.asarray(feat_src.reshape(-1)), axis=0)
    padded_feature = padded_feature.reshape(B, T, D)

    # padded_index: (t, t) for node tokens, edge_index column for edge tokens, 0 else
    edge_col = np.where(edge_tok, e_off[:, None] + (tok - nn), 0).astype(np.int32)
    edge_pair = jnp.take(jnp.asarray(edge_index, jnp.int32),
                         jnp.asarray(edge_col.reshape(-1)), axis=1).T.reshape(B, T, 2)
    node_val = np.where(node_tok, tok, 0).astype(np.int32)
    node_pair = jnp.asarray(np.stack([node_val, node_val], axis=-1))
    padded_index = jnp.where(jnp.asarray(node_tok)[..., None], node_pair,
                             jnp.where(jnp.asarray(edge_tok)[..., None], edge_pair, 0))

    # global ORF-table id for each token endpoint (per-graph local -> global)
    flat_sub = jnp.concatenate(
        [jnp.asarray(s, jnp.int32) for s in indices_subnodes], axis=0)
    global_index = jnp.take(
        flat_sub,
        (jnp.asarray(n_off)[:, None, None] + padded_index).reshape(-1),
        axis=0).reshape(B, T, 2)

    padding_mask = jnp.asarray(pad_tok)
    padded_node_mask = jnp.asarray(node_tok)
    padded_edge_mask = jnp.asarray(edge_tok)
    return (padded_index, global_index, padded_feature,
            padding_mask, padded_node_mask, padded_edge_mask)


def graph_feature_tokenizer_forward(params, batched_data, perturb=None):
    node_data = batched_data['node_data']
    node_num = batched_data['node_num']
    edge_index = batched_data['edge_index']
    edge_data = batched_data['edge_data']
    edge_num = batched_data['edge_num']
    indices_subnodes = batched_data['indices_subnodes']

    (padded_index, global_index, padded_feature, padding_mask,
     padded_node_mask, padded_edge_mask) = prepare_tokens(
        node_data, edge_index, edge_data, node_num, edge_num,
        indices_subnodes, perturb)

    # Precompute the tiny per-node ORF projections: orf @ W_top and orf @ W_bot,
    # stacked into one [2*NN, D] table that the kernel keeps VMEM-resident.
    orf = params['orf']
    w_t = params['orf_encoder_w_t']          # [2D, D] (Linear weight, transposed)
    D = w_t.shape[1]
    orf_w_cat = jnp.concatenate(
        [orf @ w_t[:D, :], orf @ w_t[D:, :]], axis=0)     # [2*NN, D]

    keep = (~padding_mask).astype(jnp.int32)
    zeros = jnp.zeros_like(keep)
    meta = jnp.stack([global_index[..., 0], global_index[..., 1],
                      padded_index[..., 0], padded_index[..., 1],
                      keep, zeros, zeros, zeros], axis=-1)   # [B, T, 8] int32

    padded_feature_out = tokenizer_pallas(
        padded_feature, meta, orf_w_cat, params['order_encoder_w'])

    return (padded_feature_out, padding_mask, padded_index,
            padded_node_mask, padded_edge_mask)


# ----------------------------------------------------------------------------
# Pure-JAX reference: literal (per-graph loop) translation of the PyTorch forward
# ----------------------------------------------------------------------------
def reference_forward(node_data, edge_index, edge_data, node_num, edge_num,
                      indices_subnodes, orf, w_t, ord_w):
    B = len(node_num)
    D = node_data.shape[-1]
    seq_len = [n + e for n, e in zip(node_num, edge_num)]
    T = max(seq_len)
    max_n = max(node_num)

    feats, idxs = [], []
    n_off = e_off = 0
    for g in range(B):
        n, e = node_num[g], edge_num[g]
        nf = node_data[n_off:n_off + n]
        ef = edge_data[e_off:e_off + e]
        feats.append(jnp.concatenate(
            [nf, ef, jnp.zeros((T - n - e, D), node_data.dtype)], axis=0))
        nid = jnp.stack([jnp.arange(n, dtype=jnp.int32)] * 2, axis=1)
        eid = edge_index[:, e_off:e_off + e].T.astype(jnp.int32)
        idxs.append(jnp.concatenate(
            [nid, eid, jnp.zeros((T - n - e, 2), jnp.int32)], axis=0))
        n_off += n
        e_off += e
    pfeat = jnp.stack(feats)
    pidx = jnp.stack(idxs)
    pmask = jnp.asarray(np.arange(T)[None, :] >= np.array(seq_len)[:, None])

    rows = []
    for g in range(B):
        nid = orf[indices_subnodes[g]]
        rows.append(jnp.concatenate(
            [nid, jnp.zeros((max_n - node_num[g], D), orf.dtype)], axis=0))
    pnid = jnp.stack(rows)
    i0 = jnp.broadcast_to(pidx[:, :, 0:1], (B, T, D))
    i1 = jnp.broadcast_to(pidx[:, :, 1:2], (B, T, D))
    e0 = jnp.take_along_axis(pnid, i0, axis=1)
    e1 = jnp.take_along_axis(pnid, i1, axis=1)
    orf_embed = jnp.concatenate([e0, e1], axis=-1)

    order = (pidx[..., 0] == pidx[..., 1]).astype(jnp.int32)
    out = pfeat + jnp.einsum('btk,kd->btd', orf_embed, w_t) + ord_w[order]
    out = jnp.where(pmask[..., None], 0.0, out)
    return out, pmask, pidx


# ----------------------------------------------------------------------------
# Main
# ----------------------------------------------------------------------------
if __name__ == "__main__":
    key = jax.random.PRNGKey(0)
    hidden_dim = 32           # D
    num_nodes_table = 64      # args.num_nodes (ORF table rows)
    node_num = [4, 3]
    edge_num = [3, 4]
    k1, k2, k3, k4, k5 = jax.random.split(key, 5)

    node_data = jax.random.normal(k1, (sum(node_num), hidden_dim), jnp.float32)
    edge_data = jax.random.normal(k2, (sum(edge_num), hidden_dim), jnp.float32)
    # local (per-graph) node indices; graph0 has 3 edges, graph1 has 4 (incl. a self-loop)
    edge_index = jnp.array([[0, 1, 3, 0, 1, 2, 1],
                            [1, 2, 0, 1, 2, 0, 1]], dtype=jnp.int32)
    indices_subnodes = [jnp.array([5, 12, 3, 40], dtype=jnp.int32),
                        jnp.array([7, 1, 22], dtype=jnp.int32)]

    # Deterministic parameter init (mirrors the module's __init__ shapes)
    order_encoder_w = 0.02 * jax.random.normal(k3, (2, hidden_dim), jnp.float32)
    orf_encoder_w_t = (1.0 / math.sqrt(2 * hidden_dim)) * jax.random.normal(
        k4, (2 * hidden_dim, hidden_dim), jnp.float32)
    q, _ = jnp.linalg.qr(jax.random.normal(k5, (num_nodes_table, hidden_dim), jnp.float32))
    orf = q / jnp.linalg.norm(q, axis=1, keepdims=True)

    params = dict(order_encoder_w=order_encoder_w,
                  orf_encoder_w_t=orf_encoder_w_t,
                  orf=orf)
    batched_data = dict(node_data=node_data, node_num=node_num,
                        edge_index=edge_index, edge_data=edge_data,
                        edge_num=edge_num, indices_subnodes=indices_subnodes)

    out, padding_mask, padded_index, pnm, pem = graph_feature_tokenizer_forward(
        params, batched_data)
    out = jax.block_until_ready(out)

    ref_out, ref_mask, ref_idx = reference_forward(
        node_data, edge_index, edge_data, node_num, edge_num,
        indices_subnodes, orf, orf_encoder_w_t, order_encoder_w)

    np.testing.assert_array_equal(np.asarray(padding_mask), np.asarray(ref_mask))
    np.testing.assert_array_equal(np.asarray(padded_index), np.asarray(ref_idx))
    np.testing.assert_allclose(np.asarray(out), np.asarray(ref_out),
                               rtol=1e-5, atol=1e-5)
    print("KERNEL_OK")
</pallas_src>

<mosaic_0001>
module attributes {stable_mosaic.version = 11 : i64} {
  func.func @tokenizer_kernel(%arg0: i32, %arg1: memref<16x8xi32, #tpu.memory_space<vmem>>, %arg2: memref<16x32xf32, #tpu.memory_space<vmem>>, %arg3: memref<128x32xf32, #tpu.memory_space<vmem>>, %arg4: memref<2x32xf32, #tpu.memory_space<vmem>>, %arg5: memref<16x32xf32, #tpu.memory_space<vmem>>) attributes {dimension_semantics = [#tpu.dimension_semantics<parallel>], iteration_bounds = array<i64: 1>, scalar_prefetch = 0 : i64, scratch_operands = 0 : i64, tpu.core_type = #tpu.core_type<tc>, window_params = [{transform_indices = @transform_0, window_bounds = array<i64: 16, 8>}, {transform_indices = @transform_1, window_bounds = array<i64: 16, 32>}, {pipeline_mode = #tpu.pipeline_mode<synchronous>, transform_indices = @transform_2, window_bounds = array<i64: 128, 32>}, {pipeline_mode = #tpu.pipeline_mode<synchronous>, transform_indices = @transform_3, window_bounds = array<i64: 2, 32>}, {transform_indices = @transform_4, window_bounds = array<i64: 16, 32>}]} {
    %c0 = arith.constant 0 : index
    %c0_0 = arith.constant 0 : index
    %0 = vector.load %arg1[%c0, %c0_0] : memref<16x8xi32, #tpu.memory_space<vmem>>, vector<16x8xi32>
    %1 = vector.extract_strided_slice %0 {offsets = [0, 0], sizes = [16, 1], strides = [1, 1]} : vector<16x8xi32> to vector<16x1xi32>
    %2 = vector.extract_strided_slice %0 {offsets = [0, 1], sizes = [16, 1], strides = [1, 1]} : vector<16x8xi32> to vector<16x1xi32>
    %3 = vector.extract_strided_slice %0 {offsets = [0, 2], sizes = [16, 1], strides = [1, 1]} : vector<16x8xi32> to vector<16x1xi32>
    %4 = vector.extract_strided_slice %0 {offsets = [0, 3], sizes = [16, 1], strides = [1, 1]} : vector<16x8xi32> to vector<16x1xi32>
    %5 = vector.extract_strided_slice %0 {offsets = [0, 4], sizes = [16, 1], strides = [1, 1]} : vector<16x8xi32> to vector<16x1xi32>
    %6 = arith.sitofp %5 : vector<16x1xi32> to vector<16x1xf32>
    %7 = tpu.iota {dimensions = array<i32: 1>} : vector<16x128xi32>
    %8 = vector.broadcast %1 : vector<16x1xi32> to vector<16x128xi32>
    %9 = arith.cmpi eq, %7, %8 : vector<16x128xi32>
    %c64_i32 = arith.constant 64 : i32
    %10 = vector.broadcast %c64_i32 : i32 to vector<16x1xi32>
    %11 = arith.addi %2, %10 : vector<16x1xi32>
    %12 = vector.broadcast %11 : vector<16x1xi32> to vector<16x128xi32>
    %13 = arith.cmpi eq, %7, %12 : vector<16x128xi32>
    %14 = arith.ori %9, %13 : vector<16x128xi1>
    %15 = arith.extui %14 : vector<16x128xi1> to vector<16x128xi32>
    %16 = arith.sitofp %15 : vector<16x128xi32> to vector<16x128xf32>
    %c0_1 = arith.constant 0 : index
    %c0_2 = arith.constant 0 : index
    %17 = vector.load %arg3[%c0_1, %c0_2] : memref<128x32xf32, #tpu.memory_space<vmem>>, vector<128x32xf32>
    %cst = arith.constant dense<0.000000e+00> : vector<16x32xf32>
    %18 = tpu.matmul %16, %17, %cst {dimension_numbers = #tpu.dot_dimension_numbers<[1], [0], [0], [1], [0, 0, 1, 1], [], []>} : vector<16x128xf32>, vector<128x32xf32>, vector<16x32xf32> -> vector<16x32xf32>
    %c0_3 = arith.constant 0 : index
    %c0_4 = arith.constant 0 : index
    %19 = vector.load %arg4[%c0_3, %c0_4] : memref<2x32xf32, #tpu.memory_space<vmem>>, vector<1x32xf32>
    %c1 = arith.constant 1 : index
    %c0_5 = arith.constant 0 : index
    %20 = vector.load %arg4[%c1, %c0_5] : memref<2x32xf32, #tpu.memory_space<vmem>>, vector<1x32xf32>
    %21 = arith.subf %20, %19 : vector<1x32xf32>
    %22 = arith.cmpi eq, %3, %4 : vector<16x1xi32>
    %23 = arith.extui %22 : vector<16x1xi1> to vector<16x1xi32>
    %24 = arith.sitofp %23 : vector<16x1xi32> to vector<16x1xf32>
    %c0_6 = arith.constant 0 : index
    %c0_7 = arith.constant 0 : index
    %25 = vector.load %arg2[%c0_6, %c0_7] : memref<16x32xf32, #tpu.memory_space<vmem>>, vector<16x32xf32>
    %26 = arith.addf %25, %18 : vector<16x32xf32>
    %27 = vector.broadcast %19 : vector<1x32xf32> to vector<16x32xf32>
    %28 = arith.addf %26, %27 : vector<16x32xf32>
    %29 = vector.broadcast %24 : vector<16x1xf32> to vector<16x32xf32>
    %30 = vector.broadcast %21 : vector<1x32xf32> to vector<16x32xf32>
    %31 = arith.mulf %29, %30 : vector<16x32xf32>
    %32 = arith.addf %28, %31 : vector<16x32xf32>
    %33 = vector.broadcast %6 : vector<16x1xf32> to vector<16x32xf32>
    %34 = arith.mulf %32, %33 : vector<16x32xf32>
    %c0_8 = arith.constant 0 : index
    %c0_9 = arith.constant 0 : index
    %35 = vector.load %arg5[%c0_8, %c0_9] : memref<16x32xf32, #tpu.memory_space<vmem>>, vector<16x32xf32>
    tpu.vector_store %arg5[%c0_8, %c0_9], %34 {strides = array<i32>} : memref<16x32xf32, #tpu.memory_space<vmem>>, vector<16x32xf32>,
    return
  }
  func.func @transform_0(%arg0: i32) -> (i32, i32) {
    %c0_i32 = arith.constant 0 : i32
    %c0_i32_0 = arith.constant 0 : i32
    return %arg0, %c0_i32 : i32, i32
  }
  func.func @transform_1(%arg0: i32) -> (i32, i32) {
    %c0_i32 = arith.constant 0 : i32
    %c0_i32_0 = arith.constant 0 : i32
    return %arg0, %c0_i32 : i32, i32
  }
  func.func @transform_2(%arg0: i32) -> (i32, i32) {
    %c0_i32 = arith.constant 0 : i32
    %c0_i32_0 = arith.constant 0 : i32
    %c0_i32_1 = arith.constant 0 : i32
    return %c0_i32, %c0_i32_0 : i32, i32
  }
  func.func @transform_3(%arg0: i32) -> (i32, i32) {
    %c0_i32 = arith.constant 0 : i32
    %c0_i32_0 = arith.constant 0 : i32
    %c0_i32_1 = arith.constant 0 : i32
    return %c0_i32, %c0_i32_0 : i32, i32
  }
  func.func @transform_4(%arg0: i32) -> (i32, i32) {
    %c0_i32 = arith.constant 0 : i32
    %c0_i32_0 = arith.constant 0 : i32
    return %arg0, %c0_i32 : i32, i32
  }
}

</mosaic_0001>

<bundles_post_ra>
// kernel: tpu_custom_call.1
= control target key start
LH: loop header
LB: loop body
LE: loop exit
PB: predicated region body
PF: predicated region fallthrough
CT: control target
= control target key end

     0   :  { %v348_v3 = vmov 0   ;;  %v349_v13 = vmov 1   ;;  %s475_s0 = inlined_call_operand.vmem [shape: s32[16,8], index: 0, kind: input, shape index: {}]   ;;  %s476_s1 = inlined_call_operand.vmem [shape: f32[16,32], index: 1, kind: input, shape index: {}]   ;;  %s477_s2 = inlined_call_operand.vmem [shape: f32[128,32], index: 2, kind: input, shape index: {}]   ;;  %s478_s3 = inlined_call_operand.vmem [shape: f32[2,32], index: 3, kind: input, shape index: {}]   ;;  %s479_s4 = inlined_call_operand.hbm [shape: f32[16,32], index: 4, kind: output, shape index: {}]  }
   0x1   :  { %v386_v0 = vld [vmem:[%s475_s0 + $0x8] sm:$0xff]  ;;  %v391_v1 = vld [vmem:[%s475_s0] sm:$0xff]  ;;  %314 = vset.pattern.permute.xlu1 %v348_v3  ;;  %312 = vset.pattern.permute.xlu0 %v348_v3  ;;  %v50_v5 = vld [vmem:[%s477_s2 + $0x10] sm:$0xff] }
   0x2   :  { %v48_v2 = vld [vmem:[%s477_s2] sm:$0xff]  ;;  %v49_v4 = vld [vmem:[%s477_s2 + $0x8] sm:$0xff]  ;;  %v51_v6 = vld [vmem:[%s477_s2 + $0x18] sm:$0xff]  ;;  %28 = vperm.xlu1 %314, %v386_v0   ;;  %25 = vperm.xlu0 %312, %v391_v1   ;;  %v33_v8 = vadd.s32 64, %v386_v0  ;;  %v32_v9 = vadd.s32 64, %v391_v1 }
   0x3   :  { %v270_v7 = vpack.c.bf16 %v49_v4, %v48_v2  ;;  %v52_v10 = vld [vmem:[%s477_s2 + $0x20] sm:$0xff]  ;;  %v53_v11 = vld [vmem:[%s477_s2 + $0x28] sm:$0xff]  ;;  %v274_v12 = vpack.c.bf16 %v51_v6, %v50_v5 }
   0x4   :  { %v278_v14 = vpack.c.bf16 %v53_v11, %v52_v10 }
   0x5   :  { %271 = vmatprep.subr.bf16.mxu0 %v270_v7 }
   0x6   :  { %273 = vmatpush3.bf16.msra.mxu0 %v270_v7  ;;  %315 = vset.pattern.permute.xlu1 %v349_v13 }
   0x7   :  { %313 = vset.pattern.permute.xlu0 %v349_v13 }
   0x8   :  { %9 = vsyncpa [#allocation3], 0  ;;  %38 = vperm.xlu1 %315, %v33_v8   ;;  %35 = vperm.xlu0 %313, %v32_v9   ;;  %v54_v15 = vld [vmem:[%s477_s2 + $0x30] sm:$0xff]  ;;  %v55_v16 = vld [vmem:[%s477_s2 + $0x38] sm:$0xff]  ;;  %s350_s8 = smov 127   ;;  %v351_v21 = vmov 2   ;;  %v20_v28 = vcvt.s32.f32 %v391_v1  ;;  %v22_v33 = vlaneseq  ;;  %v21_v46 = vcvt.s32.f32 %v386_v0 }
   0x9   :  { %275 = vmatprep.subr.bf16.mxu0 %v274_v12  ;;  %v282_v17 = vpack.c.bf16 %v55_v16, %v54_v15  ;;  %v56_v18 = vld [vmem:[%s477_s2 + $0x40] sm:$0xff]  ;;  %v57_v19 = vld [vmem:[%s477_s2 + $0x48] sm:$0xff]  ;;  %v58_v22 = vld [vmem:[%s477_s2 + $0x50] sm:$0xff]  ;;  %v352_v24 = vmov 4   ;;  %v353_v39 = vmov 1.0   ;;  %v354_v42 = vmov 0.0  }
   0xa   :  { %277 = vmatpush3.bf16.msra.mxu0 %v274_v12  ;;  %v286_v20 = vpack.c.bf16 %v57_v19, %v56_v18  ;;  %v59_v23 = vld [vmem:[%s477_s2 + $0x58] sm:$0xff]  ;;  %v60_v26 = vld [vmem:[%s477_s2 + $0x60] sm:$0xff]  ;;  %v61_v27 = vld [vmem:[%s477_s2 + $0x68] sm:$0xff]  ;;  %v23_v36 = vand.u32 127, %v22_v33  ;;  %v157_v47 = vshrl.u32 %v22_v33, 7  ;;  %vm192_vm8 = vcmask 261120  }
   0xb   :  { %279 = vmatprep.subr.bf16.mxu0 %v278_v14  ;;  %v290_v25 = vpack.c.bf16 %v59_v23, %v58_v22  ;;  %v294_v29 = vpack.c.bf16 %v61_v27, %v60_v26  ;;  %v62_v30 = vld [vmem:[%s477_s2 + $0x70] sm:$0xff]  ;;  %v63_v31 = vld [vmem:[%s477_s2 + $0x78] sm:$0xff]  ;;  %v139_v48 = vld [vmem:[%s478_s3] sm:$0x1] }
   0xc   :  { %142 = vrot.lane.b32.xlu1 %v391_v1, %s350_s8  ;;  %144 = vrot.lane.b32.xlu0 %v386_v0, %s350_s8  ;;  %v298_v32 = vpack.c.bf16 %v63_v31, %v62_v30  ;;  %v140_v49 = vld [vmem:[%s478_s3 + $0x1] sm:$0x1]  ;;  %v158_v51 = vsub.s32 0, %v157_v47  ;;  %v153_v55 = vld [vmem:[%s476_s1 + $0x8] sm:$0xff]  ;;  %s355_s3 = smov [#allocation2]  }
   0xd   :  { %316 = vset.pattern.permute.xlu1 %v351_v21  ;;  %322 = vset.pattern.permute.xlu0 %v352_v24  ;;  %v141_v50 = vsub.f32 %v140_v49, %v139_v48  ;;  %v152_v58 = vld [vmem:[%s476_s1] sm:$0xff]  ;;  %s200_s5 = sshll.u32 %s355_s3, 4  ;;  %s201_s5 = int_to_ptr.vmem [resolvable:$true] %s200_s5 }
   0xe   :  { %281 = vmatpush3.bf16.msra.mxu0 %v278_v14  ;;  %v159_v57 = vrot.slane %v139_v48, %v158_v51  ;;  %s324_s1 = scalar_lea.vmem %s201_s5, 256  ;;  %p329_p1 = scmp.lt.s32.totalorder %s201_s5, %s201_s5 }
   0xf   :  { %283 = vmatprep.subr.bf16.mxu0 %v282_v17  ;;  %v175_v53 = vrot.slane %v141_v50, %v158_v51  ;;  %p325_p0 = scmp.ne.s32.totalorder %s201_s5, %s324_s1  ;;  %p330_p2 = scmp.lt.s32.totalorder %s324_s1, %s324_s1 }
  0x10   :  { %182 = vperm.xlu0 %322, %v20_v28  }
  0x11   :  { %p331_p3 = por %p330_p2, %p329_p1 }
  0x12   :  { %285 = vmatpush3.bf16.msra.mxu0 %v282_v17 }
  0x13   :  { %287 = vmatprep.subr.bf16.mxu0 %v286_v20  ;;  %p332_p4 = pnand %p331_p3, %p325_p0 }
  0x16   :  { %289 = vmatpush3.bf16.msra.mxu0 %v286_v20 }
  0x17   :  { %291 = vmatprep.subr.bf16.mxu0 %v290_v25 }
  0x1a   :  { %293 = vmatpush3.bf16.msra.mxu0 %v290_v25 }
  0x1b   :  { %295 = vmatprep.subr.bf16.mxu0 %v294_v29 }
  0x1e   :  { %297 = vmatpush3.bf16.msra.mxu0 %v294_v29 }
  0x1f   :  { %299 = vmatprep.subr.bf16.mxu0 %v298_v32 }
  0x22   :  { %301 = vmatpush3.bf16.msra.mxu0 %v298_v32 }
  0x81   :  { %v26_v34 = vpop.permute.xlu0 %25  ;;  %v29_v35 = vpop.permute.xlu1 %28 }
  0x82   :  { %vm31_vm0 = vcmp.eq.s32.totalorder %v23_v36, %v29_v35  ;;  %vm30_vm3 = vcmp.eq.s32.totalorder %v23_v36, %v26_v34 }
  0x87   :  { %v39_v37 = vpop.permute.xlu1 %38  ;;  %v36_v38 = vpop.permute.xlu0 %35 }
  0x88   :  { %vm41_vm1 = vcmp.eq.s32.totalorder %v23_v36, %v39_v37  ;;  %vm40_vm2 = vcmp.eq.s32.totalorder %v23_v36, %v36_v38 }
  0x89   :  { %vm43_vm4 = vmor %vm31_vm0, %vm41_vm1 }
  0x8a   :  { %vm42_vm5 = vmor %vm30_vm3, %vm40_vm2 }
  0x8b   :  { %267 = vmatprep.mubr.msk.f32.mxu0 %vm42_vm5, %v353_v39  ;;  %v143_v40 = vpop.permute.xlu1 %142  ;;  %v145_v41 = vpop.permute.xlu0 %144 }
  0x8c   :  { %268 = vmatmul.mubr.msk.f32.vlgmr.msra.gmra.mrb[0].mxu0 %vm43_vm4, %v353_v39  ;;  %vm146_vm6 = vcmp.eq.s32.totalorder %v391_v1, %v143_v40  ;;  %vm147_vm7 = vcmp.eq.s32.totalorder %v386_v0, %v145_v41 }
  0x8d   :  { %v215_v43 = vsel %vm146_vm6, 1.0, %v354_v42  ;;  %v216_v44 = vsel %vm147_vm7, 1.0, %v354_v42 }
  0x8e   :  { %v317_v45 = vpack.i.bf16 %v216_v44, %v215_v43 }
  0x8f   :  { %v183_v5 = vpop.permute.xlu0 %182 }
  0x90   :  { %318 = vperm.xlu1 %316, %v317_v45  }
  0x94   :  { %323 = vset.pattern.permute.xlu1 %v352_v24 }
  0x95   :  { %187 = vperm.xlu1 %323, %v21_v46  }
 0x10f   :  { %v319_v52 = vpop.permute.xlu1 %318 }
 0x110   :  { %v321_v54 = vunpack.i.h.bf16 %v319_v52  ;;  %v320_v56 = vunpack.i.l.bf16 %v319_v52 }
 0x112   :  { %v177_v61 = vmul.f32 %v321_v54, %v175_v53  ;;  %v176_v63 = vmul.f32 %v320_v56, %v175_v53 }
 0x114   :  { %v188_v3 = vpop.permute.xlu1 %187 }
 0x15f   :  { %v269_v59 = vpop.f32.mrb[0].mxu0 }
 0x160   :  { %v155_v60 = vadd.f32 %v269_v59, %v153_v55  ;;  %v130_v62 = vpop.f32.mrb[1].mxu0 }
 0x161   :  { %v154_v0 = vadd.f32 %v152_v58, %v130_v62 }
 0x162   :  { %v161_v1 = vadd.f32 %v159_v57, %v155_v60 }
 0x163   :  { %v160_v2 = vadd.f32 %v159_v57, %v154_v0 }
 0x164   :  { %v179_v4 = vadd.f32 %v177_v61, %v161_v1 }
 0x165   :  { %v178_v6 = vadd.f32 %v176_v63, %v160_v2 }
 0x166   :  { %v191_v7 = vmul.f32 %v188_v3, %v179_v4 }
 0x167   :  { %v190_v8 = vmul.f32 %v183_v5, %v178_v6 }
 0x168   :  { %194 = vst.msk [vmem:[#allocation2 + $0x8] sm:$0xff] %vm192_vm8, %v191_v7 }
 0x169   :  { %193 = vst.msk [vmem:[#allocation2] sm:$0xff] %vm192_vm8, %v190_v8 }
 0x16a   :  { %335 = shalt.err (!%p332_p4)
}
 0x16b   :  { %s336_s8 = scalar_lea.hbm %s479_s4, 256 }
 0x16c   :  { %p337_p5 = scmp.ne.s32.totalorder %s479_s4, %s336_s8  ;;  %p340_p6 = scmp.lt.u32.totalorder %s336_s8, %s479_s4 }
 0x16e   :  { %p342_p7 = pnand %p340_p6, %p337_p5 }
 0x170   :  { %345 = shalt.err (!%p342_p7)
}
 0x171   :  { %s356_s13 = smov 128   ;;  %s357_s14 = smov 8  }
 0x172   :  { %206 = dma.vmem_to_hbm [thread:$0]  %s201_s5, 256, %s479_s4, [#allocation3], %s356_s13, %s356_s13, %s357_s14  }
 0x173   :  { %346 = dma.done.wait [#allocation3], 256  }
 0x174   :  { %347 = vsyncadd [#allocation3], 4294967040 }
 0x175   :  { %210 = vsyncpa [#allocation3], 1 }

</bundles_post_ra>
